<compile_context>
chip_gen: v7x
topology: tpu7x:2x2x1
jax: 0.10.0
libtpu: 0.0.40
codegen_flags: <defaults>
</compile_context>

<pallas_src>
import functools

import jax
import jax.numpy as jnp
from jax.experimental import pallas as pl
from jax.experimental.pallas import tpu as pltpu


TILE_B_MAX = 1024  # max batch rows per grid step (multiple of 16 for bf16 packing)


# --------------------------------------------------------------------------- #
# Kernel: a generic fused MLP.  refs = (w0, b0, w1, b1, ..., out)
# Matmuls take bf16 operands, accumulate in f32; bias add + ReLU in f32.
# ReLU after every layer except the last.  Everything lives in VMEM.
# --------------------------------------------------------------------------- #
def _dueling_mlp_kernel(num_layers, x_ref, *refs):
    out_ref = refs[-1]
    x = x_ref[...]  # bf16 state tile
    for i in range(num_layers):
        w = refs[2 * i][...]        # bf16 weights
        b = refs[2 * i + 1][...]    # f32 bias
        y = jnp.dot(x, w, preferred_element_type=jnp.float32) + b
        if i < num_layers - 1:
            y = jnp.maximum(y, 0.0)
            x = y.astype(jnp.bfloat16)   # feed the MXU bf16 again
        else:
            x = y
    out_ref[...] = x.astype(out_ref.dtype)


# --------------------------------------------------------------------------- #
# Wrapper-side one-time fusion of the dueling structure into a plain MLP.
# --------------------------------------------------------------------------- #
def fuse_params(params, n_outputs):
    """Turn the per-module Linear params into a list of fused (W, b) layers.

    Layer list:
      shared[0], shared[1], [value_hidden | adv_hidden], final (q directly).
    The final fused weight already contains:
      - the value scalar broadcast to every output column (q = v + ...),
      - the mean-centering of the advantage (a - mean(a)).
    """
    ws0, bs0 = params["ws0"], params["bs0"]
    ws1, bs1 = params["ws1"], params["bs1"]
    wv0, bv0 = params["wv0"], params["bv0"]
    wv1, bv1 = params["wv1"], params["bv1"]
    wa0, ba0 = params["wa0"], params["ba0"]
    wa1, ba1 = params["wa1"], params["ba1"]

    # Fused head hidden layer: one (shared_dim, Hv+Ha) matmul.
    w_h0 = jnp.concatenate([wv0, wa0], axis=1)
    b_h0 = jnp.concatenate([bv0, ba0], axis=1)

    # Fold the dueling mean subtraction into the advantage output weights.
    center = jnp.eye(n_outputs, dtype=wa1.dtype) - jnp.full(
        (n_outputs, n_outputs), 1.0 / n_outputs, dtype=wa1.dtype
    )
    wa1c = wa1 @ center            # (Ha, n_outputs)
    ba1c = ba1 @ center            # (1, n_outputs)

    # Final fused layer producing q directly: q = v + (a - mean(a)).
    hv = wv1.shape[0]
    w_q = jnp.concatenate(
        [jnp.broadcast_to(wv1, (hv, n_outputs)), wa1c], axis=0
    )                              # (Hv+Ha, n_outputs)
    b_q = bv1 + ba1c               # (1, n_outputs)

    return ((ws0, bs0), (ws1, bs1), (w_h0, b_h0), (w_q, b_q))


# --------------------------------------------------------------------------- #
# pallas_call wrapper: adaptive batch tile, bf16 MXU operands, weights
# VMEM-resident (constant index_map).
# --------------------------------------------------------------------------- #
@functools.partial(jax.jit, static_argnames=("tile_b_max",))
def dueling_net_forward(state, fused_layers, tile_b_max=TILE_B_MAX):
    batch, n_in = state.shape
    n_out = fused_layers[-1][0].shape[1]
    num_layers = len(fused_layers)

    # Adaptive tile: small/medium batches collapse to one grid step without
    # padding up to the max tile; large batches use TILE_B_MAX-row tiles.
    round16 = -(-batch // 16) * 16                # bf16 sublane-friendly
    tile_b = min(round16, tile_b_max)
    padded_b = -(-batch // tile_b) * tile_b
    grid = (padded_b // tile_b,)

    # bf16 MXU operands; biases stay f32 for the f32 epilogue math.
    state = state.astype(jnp.bfloat16)
    if padded_b != batch:
        state = jnp.pad(state, ((0, padded_b - batch), (0, 0)))

    weight_args = []
    weight_specs = []
    for w, b in fused_layers:
        weight_args += [w.astype(jnp.bfloat16), b.astype(jnp.float32)]
        # Constant index_map -> the block is VMEM-resident across the whole grid.
        weight_specs += [
            pl.BlockSpec(w.shape, lambda i: (0, 0)),
            pl.BlockSpec(b.shape, lambda i: (0, 0)),
        ]

    flops = 2 * padded_b * sum(w.shape[0] * w.shape[1] for w, _ in fused_layers)
    bytes_accessed = (
        padded_b * (n_in * 2 + n_out * 4)
        + sum(w.size * 2 + b.size * 4 for w, b in fused_layers)
    )

    q = pl.pallas_call(
        functools.partial(_dueling_mlp_kernel, num_layers),
        out_shape=jax.ShapeDtypeStruct((padded_b, n_out), jnp.float32),
        grid=grid,
        in_specs=[pl.BlockSpec((tile_b, n_in), lambda i: (i, 0))] + weight_specs,
        out_specs=pl.BlockSpec((tile_b, n_out), lambda i: (i, 0)),
        compiler_params=pltpu.CompilerParams(
            dimension_semantics=("parallel",)
        ),
        cost_estimate=pl.CostEstimate(
            flops=flops, transcendentals=0, bytes_accessed=bytes_accessed
        ),
    )(state, *weight_args)
    return q[:batch]


# --------------------------------------------------------------------------- #
# Synthetic init + pure-JAX reference (unfused, f32) of the PyTorch forward.
# --------------------------------------------------------------------------- #
def init_params(key, n_inputs, n_outputs, shared_conf, value_conf, advantage_conf):
    """Each nn.Linear(in, out) stored as weight (in, out) and bias (1, out)."""
    dims = {
        "s0": (n_inputs, shared_conf[0]),
        "s1": (shared_conf[0], shared_conf[1]),
        "v0": (shared_conf[-1], value_conf[0]),
        "v1": (value_conf[-1], 1),
        "a0": (shared_conf[-1], advantage_conf[0]),
        "a1": (advantage_conf[-1], n_outputs),
    }
    params = {}
    keys = jax.random.split(key, len(dims))
    for k, (name, (fan_in, fan_out)) in zip(keys, dims.items()):
        wk, bk = jax.random.split(k)
        bound = 1.0 / jnp.sqrt(fan_in)
        params["w" + name] = jax.random.uniform(
            wk, (fan_in, fan_out), jnp.float32, -bound, bound
        )
        params["b" + name] = jax.random.uniform(
            bk, (1, fan_out), jnp.float32, -bound, bound
        )
    return params


def reference_forward(state, params):
    x = jax.nn.relu(state @ params["ws0"] + params["bs0"])
    x = jax.nn.relu(x @ params["ws1"] + params["bs1"])
    v = jax.nn.relu(x @ params["wv0"] + params["bv0"])
    v = v @ params["wv1"] + params["bv1"]
    a = jax.nn.relu(x @ params["wa0"] + params["ba0"])
    a = a @ params["wa1"] + params["ba1"]
    a_mean = jnp.mean(a, axis=1, keepdims=True)
    return v + a - a_mean


if __name__ == "__main__":
    n_inputs = 32
    n_outputs = 8
    shared_conf = [64, 64]
    value_conf = [32]
    advantage_conf = [32]

    key = jax.random.PRNGKey(0)
    pkey, skey1, skey2, skey3 = jax.random.split(key, 4)
    params = init_params(
        pkey, n_inputs, n_outputs, shared_conf, value_conf, advantage_conf
    )
    fused = fuse_params(params, n_outputs)

    # bf16 MXU inputs with f32 accumulation -> relaxed tolerances.
    ATOL = 5e-2
    RTOL = 5e-2

    # Small act()-style batch: adaptive tile -> single grid step, pads 8 -> 16.
    state_small = jax.random.normal(skey1, (8, n_inputs), jnp.float32)
    q_small = dueling_net_forward(state_small, fused)
    jax.block_until_ready(q_small)
    ref_small = reference_forward(state_small, params)
    assert q_small.shape == (8, n_outputs)
    assert jnp.allclose(q_small, ref_small, atol=ATOL, rtol=RTOL), "mismatch (small)"

    # Medium, non-multiple batch: still a single grid step (tile_b = 208).
    state_mid = jax.random.normal(skey2, (200, n_inputs), jnp.float32)
    q_mid = dueling_net_forward(state_mid, fused)
    jax.block_until_ready(q_mid)
    ref_mid = reference_forward(state_mid, params)
    assert q_mid.shape == (200, n_outputs)
    assert jnp.allclose(q_mid, ref_mid, atol=ATOL, rtol=RTOL), "mismatch (mid)"

    # Large batch exercising grid > 1 (tile_b = 1024) and the pad/slice path.
    state_big = jax.random.normal(skey3, (2500, n_inputs), jnp.float32)
    q_big = dueling_net_forward(state_big, fused)
    jax.block_until_ready(q_big)
    ref_big = reference_forward(state_big, params)
    assert q_big.shape == (2500, n_outputs)
    assert jnp.allclose(q_big, ref_big, atol=ATOL, rtol=RTOL), "mismatch (big)"

    print("KERNEL_OK")
</pallas_src>

<mosaic_0001>
module attributes {stable_mosaic.version = 11 : i64} {
  func.func @_dueling_mlp_kernel(%arg0: i32, %arg1: memref<16x32xbf16, #tpu.memory_space<vmem>>, %arg2: memref<32x64xbf16, #tpu.memory_space<vmem>>, %arg3: memref<1x64xf32, #tpu.memory_space<vmem>>, %arg4: memref<64x64xbf16, #tpu.memory_space<vmem>>, %arg5: memref<1x64xf32, #tpu.memory_space<vmem>>, %arg6: memref<64x64xbf16, #tpu.memory_space<vmem>>, %arg7: memref<1x64xf32, #tpu.memory_space<vmem>>, %arg8: memref<64x8xbf16, #tpu.memory_space<vmem>>, %arg9: memref<1x8xf32, #tpu.memory_space<vmem>>, %arg10: memref<16x8xf32, #tpu.memory_space<vmem>>) attributes {dimension_semantics = [#tpu.dimension_semantics<parallel>], iteration_bounds = array<i64: 1>, scalar_prefetch = 0 : i64, scratch_operands = 0 : i64, tpu.core_type = #tpu.core_type<tc>, window_params = [{transform_indices = @transform_0, window_bounds = array<i64: 16, 32>}, {pipeline_mode = #tpu.pipeline_mode<synchronous>, transform_indices = @transform_1, window_bounds = array<i64: 32, 64>}, {pipeline_mode = #tpu.pipeline_mode<synchronous>, transform_indices = @transform_2, window_bounds = array<i64: 1, 64>}, {pipeline_mode = #tpu.pipeline_mode<synchronous>, transform_indices = @transform_3, window_bounds = array<i64: 64, 64>}, {pipeline_mode = #tpu.pipeline_mode<synchronous>, transform_indices = @transform_4, window_bounds = array<i64: 1, 64>}, {pipeline_mode = #tpu.pipeline_mode<synchronous>, transform_indices = @transform_5, window_bounds = array<i64: 64, 64>}, {pipeline_mode = #tpu.pipeline_mode<synchronous>, transform_indices = @transform_6, window_bounds = array<i64: 1, 64>}, {pipeline_mode = #tpu.pipeline_mode<synchronous>, transform_indices = @transform_7, window_bounds = array<i64: 64, 8>}, {pipeline_mode = #tpu.pipeline_mode<synchronous>, transform_indices = @transform_8, window_bounds = array<i64: 1, 8>}, {transform_indices = @transform_9, window_bounds = array<i64: 16, 8>}]} {
    %c0 = arith.constant 0 : index
    %c0_0 = arith.constant 0 : index
    %0 = vector.load %arg1[%c0, %c0_0] : memref<16x32xbf16, #tpu.memory_space<vmem>>, vector<16x32xbf16>
    %c0_1 = arith.constant 0 : index
    %c0_2 = arith.constant 0 : index
    %1 = vector.load %arg2[%c0_1, %c0_2] : memref<32x64xbf16, #tpu.memory_space<vmem>>, vector<32x64xbf16>
    %c0_3 = arith.constant 0 : index
    %c0_4 = arith.constant 0 : index
    %2 = vector.load %arg3[%c0_3, %c0_4] : memref<1x64xf32, #tpu.memory_space<vmem>>, vector<1x64xf32>
    %cst = arith.constant dense<0.000000e+00> : vector<16x64xf32>
    %3 = tpu.matmul %0, %1, %cst {dimension_numbers = #tpu.dot_dimension_numbers<[1], [0], [0], [1], [0, 0, 1, 1], [], []>} : vector<16x32xbf16>, vector<32x64xbf16>, vector<16x64xf32> -> vector<16x64xf32>
    %4 = vector.broadcast %2 : vector<1x64xf32> to vector<16x64xf32>
    %5 = arith.addf %3, %4 : vector<16x64xf32>
    %cst_5 = arith.constant 0.000000e+00 : f32
    %6 = vector.broadcast %cst_5 : f32 to vector<16x64xf32>
    %7 = arith.maximumf %5, %6 : vector<16x64xf32>
    %8 = arith.truncf %7 : vector<16x64xf32> to vector<16x64xbf16>
    %c0_6 = arith.constant 0 : index
    %c0_7 = arith.constant 0 : index
    %9 = vector.load %arg4[%c0_6, %c0_7] : memref<64x64xbf16, #tpu.memory_space<vmem>>, vector<64x64xbf16>
    %c0_8 = arith.constant 0 : index
    %c0_9 = arith.constant 0 : index
    %10 = vector.load %arg5[%c0_8, %c0_9] : memref<1x64xf32, #tpu.memory_space<vmem>>, vector<1x64xf32>
    %cst_10 = arith.constant dense<0.000000e+00> : vector<16x64xf32>
    %11 = tpu.matmul %8, %9, %cst_10 {dimension_numbers = #tpu.dot_dimension_numbers<[1], [0], [0], [1], [0, 0, 1, 1], [], []>} : vector<16x64xbf16>, vector<64x64xbf16>, vector<16x64xf32> -> vector<16x64xf32>
    %12 = vector.broadcast %10 : vector<1x64xf32> to vector<16x64xf32>
    %13 = arith.addf %11, %12 : vector<16x64xf32>
    %cst_11 = arith.constant 0.000000e+00 : f32
    %14 = vector.broadcast %cst_11 : f32 to vector<16x64xf32>
    %15 = arith.maximumf %13, %14 : vector<16x64xf32>
    %16 = arith.truncf %15 : vector<16x64xf32> to vector<16x64xbf16>
    %c0_12 = arith.constant 0 : index
    %c0_13 = arith.constant 0 : index
    %17 = vector.load %arg6[%c0_12, %c0_13] : memref<64x64xbf16, #tpu.memory_space<vmem>>, vector<64x64xbf16>
    %c0_14 = arith.constant 0 : index
    %c0_15 = arith.constant 0 : index
    %18 = vector.load %arg7[%c0_14, %c0_15] : memref<1x64xf32, #tpu.memory_space<vmem>>, vector<1x64xf32>
    %cst_16 = arith.constant dense<0.000000e+00> : vector<16x64xf32>
    %19 = tpu.matmul %16, %17, %cst_16 {dimension_numbers = #tpu.dot_dimension_numbers<[1], [0], [0], [1], [0, 0, 1, 1], [], []>} : vector<16x64xbf16>, vector<64x64xbf16>, vector<16x64xf32> -> vector<16x64xf32>
    %20 = vector.broadcast %18 : vector<1x64xf32> to vector<16x64xf32>
    %21 = arith.addf %19, %20 : vector<16x64xf32>
    %cst_17 = arith.constant 0.000000e+00 : f32
    %22 = vector.broadcast %cst_17 : f32 to vector<16x64xf32>
    %23 = arith.maximumf %21, %22 : vector<16x64xf32>
    %24 = arith.truncf %23 : vector<16x64xf32> to vector<16x64xbf16>
    %c0_18 = arith.constant 0 : index
    %c0_19 = arith.constant 0 : index
    %25 = vector.load %arg8[%c0_18, %c0_19] : memref<64x8xbf16, #tpu.memory_space<vmem>>, vector<64x8xbf16>
    %c0_20 = arith.constant 0 : index
    %c0_21 = arith.constant 0 : index
    %26 = vector.load %arg9[%c0_20, %c0_21] : memref<1x8xf32, #tpu.memory_space<vmem>>, vector<1x8xf32>
    %cst_22 = arith.constant dense<0.000000e+00> : vector<16x8xf32>
    %27 = tpu.matmul %24, %25, %cst_22 {dimension_numbers = #tpu.dot_dimension_numbers<[1], [0], [0], [1], [0, 0, 1, 1], [], []>} : vector<16x64xbf16>, vector<64x8xbf16>, vector<16x8xf32> -> vector<16x8xf32>
    %28 = vector.broadcast %26 : vector<1x8xf32> to vector<16x8xf32>
    %29 = arith.addf %27, %28 : vector<16x8xf32>
    %c0_23 = arith.constant 0 : index
    %c0_24 = arith.constant 0 : index
    %30 = vector.load %arg10[%c0_23, %c0_24] : memref<16x8xf32, #tpu.memory_space<vmem>>, vector<16x8xf32>
    tpu.vector_store %arg10[%c0_23, %c0_24], %29 {strides = array<i32>} : memref<16x8xf32, #tpu.memory_space<vmem>>, vector<16x8xf32>,
    return
  }
  func.func @transform_0(%arg0: i32) -> (i32, i32) {
    %c0_i32 = arith.constant 0 : i32
    %c0_i32_0 = arith.constant 0 : i32
    return %arg0, %c0_i32 : i32, i32
  }
  func.func @transform_1(%arg0: i32) -> (i32, i32) {
    %c0_i32 = arith.constant 0 : i32
    %c0_i32_0 = arith.constant 0 : i32
    %c0_i32_1 = arith.constant 0 : i32
    return %c0_i32, %c0_i32_0 : i32, i32
  }
  func.func @transform_2(%arg0: i32) -> (i32, i32) {
    %c0_i32 = arith.constant 0 : i32
    %c0_i32_0 = arith.constant 0 : i32
    %c0_i32_1 = arith.constant 0 : i32
    return %c0_i32, %c0_i32_0 : i32, i32
  }
  func.func @transform_3(%arg0: i32) -> (i32, i32) {
    %c0_i32 = arith.constant 0 : i32
    %c0_i32_0 = arith.constant 0 : i32
    %c0_i32_1 = arith.constant 0 : i32
    return %c0_i32, %c0_i32_0 : i32, i32
  }
  func.func @transform_4(%arg0: i32) -> (i32, i32) {
    %c0_i32 = arith.constant 0 : i32
    %c0_i32_0 = arith.constant 0 : i32
    %c0_i32_1 = arith.constant 0 : i32
    return %c0_i32, %c0_i32_0 : i32, i32
  }
  func.func @transform_5(%arg0: i32) -> (i32, i32) {
    %c0_i32 = arith.constant 0 : i32
    %c0_i32_0 = arith.constant 0 : i32
    %c0_i32_1 = arith.constant 0 : i32
    return %c0_i32, %c0_i32_0 : i32, i32
  }
  func.func @transform_6(%arg0: i32) -> (i32, i32) {
    %c0_i32 = arith.constant 0 : i32
    %c0_i32_0 = arith.constant 0 : i32
    %c0_i32_1 = arith.constant 0 : i32
    return %c0_i32, %c0_i32_0 : i32, i32
  }
  func.func @transform_7(%arg0: i32) -> (i32, i32) {
    %c0_i32 = arith.constant 0 : i32
    %c0_i32_0 = arith.constant 0 : i32
    %c0_i32_1 = arith.constant 0 : i32
    return %c0_i32, %c0_i32_0 : i32, i32
  }
  func.func @transform_8(%arg0: i32) -> (i32, i32) {
    %c0_i32 = arith.constant 0 : i32
    %c0_i32_0 = arith.constant 0 : i32
    %c0_i32_1 = arith.constant 0 : i32
    return %c0_i32, %c0_i32_0 : i32, i32
  }
  func.func @transform_9(%arg0: i32) -> (i32, i32) {
    %c0_i32 = arith.constant 0 : i32
    %c0_i32_0 = arith.constant 0 : i32
    return %arg0, %c0_i32 : i32, i32
  }
}

</mosaic_0001>

<bundles_post_ra>
// kernel: dueling_net_forward.1
= control target key start
LH: loop header
LB: loop body
LE: loop exit
PB: predicated region body
PF: predicated region fallthrough
CT: control target
= control target key end

     0   :  { %v476_v0 = vmov 0.0   ;;  %vm477_vm0 = vmmov 0   ;;  %vm63_vm1 = vcmask 261120   ;;  %vm150_vm2 = vcmask 523264   ;;  %s616_s1 = inlined_call_operand.vmem [shape: bf16[32,64], index: 1, kind: input, shape index: {}]   ;;  %s617_s3 = inlined_call_operand.vmem [shape: bf16[64,64], index: 3, kind: input, shape index: {}]   ;;  %s618_s0 = inlined_call_operand.vmem [shape: bf16[16,32], index: 0, kind: input, shape index: {}]   ;;  %s619_s5 = inlined_call_operand.vmem [shape: bf16[64,64], index: 5, kind: input, shape index: {}]   ;;  %s620_s2 = inlined_call_operand.vmem [shape: f32[1,64], index: 2, kind: input, shape index: {}]   ;;  %s621_s7 = inlined_call_operand.vmem [shape: bf16[64,8], index: 7, kind: input, shape index: {}]   ;;  %s622_s4 = inlined_call_operand.vmem [shape: f32[1,64], index: 4, kind: input, shape index: {}]   ;;  %s623_s6 = inlined_call_operand.vmem [shape: f32[1,64], index: 6, kind: input, shape index: {}]   ;;  %s624_s8 = inlined_call_operand.vmem [shape: f32[1,8], index: 8, kind: input, shape index: {}]   ;;  %s625_s9 = inlined_call_operand.vmem [shape: f32[16,8], index: 9, kind: output, shape index: {}]  }
   0x1   :  { %415 = vmatprep.subr.bf16.mxu0 %v476_v0  ;;  %v461_v1 = vld [vmem:[%s616_s1] sm:$0xff]   ;;  %419 = vmatprep.mubr.msk.bf16.mxu0 %vm477_vm0, %v476_v0  ;;  %v462_v2 = vld [vmem:[%s616_s1 + $0x8] sm:$0xff]   ;;  %v466_v6 = vld [vmem:[%s617_s3 + $0x10] sm:$0xff]   ;;  %vm367_vm3 = vcmask 64512  }
   0x2   :  { %423 = vmatprep.subr.bf16.mxu1 %v476_v0  ;;  %431 = vmatprep.mubr.msk.bf16.mxu1 %vm477_vm0, %v476_v0  ;;  %v464_v3 = vld [vmem:[%s617_s3] sm:$0xff]   ;;  %v465_v5 = vld [vmem:[%s617_s3 + $0x8] sm:$0xff]   ;;  %v467_v7 = vld [vmem:[%s617_s3 + $0x18] sm:$0xff]  }
   0x3   :  { %416 = vmatpush3.bf16.msra.mxu0 %v461_v1  ;;  %v463_v4 = vld [vmem:[%s618_s0] sm:$0xff]   ;;  %424 = vmatpush3.bf16.msra.mxu1 %v464_v3  ;;  %v469_v9 = vld [vmem:[%s619_s5 + $0x8] sm:$0xff]   ;;  %v470_v20 = vld [vmem:[%s619_s5 + $0x10] sm:$0xff]  }
   0x4   :  { %417 = vmatprep.subr.bf16.mxu0 %v476_v0  ;;  %425 = vmatprep.subr.bf16.mxu1 %v476_v0  ;;  %v468_v8 = vld [vmem:[%s619_s5] sm:$0xff]   ;;  %v471_v21 = vld [vmem:[%s619_s5 + $0x18] sm:$0xff]   ;;  %v473_v23 = vld [vmem:[%s621_s7 + $0x8] sm:$0xff]  }
   0x5   :  { %v374_v10 = vld [vmem:[%s620_s2] ss:$0 sm:$0xff]  ;;  %v474_v34 = vld [vmem:[%s621_s7 + $0x10] sm:$0xff]   ;;  %v475_v35 = vld [vmem:[%s621_s7 + $0x18] sm:$0xff]  }
   0x6   :  { %v472_v22 = vld [vmem:[%s621_s7] sm:$0xff]  }
   0x7   :  { %418 = vmatpush3.bf16.msra.mxu0 %v462_v2  ;;  %426 = vmatpush3.bf16.msra.mxu1 %v465_v5  ;;  %v379_v24 = vld [vmem:[%s622_s4] ss:$0 sm:$0xff] }
   0x8   :  { %435 = vmatprep.subr.bf16.mxu0 %v476_v0  ;;  %427 = vmatprep.subr.bf16.mxu1 %v476_v0  ;;  %v385_v36 = vld [vmem:[%s623_s6] ss:$0 sm:$0xff] }
   0x9   :  { %v391_v46 = vld [vmem:[%s624_s8] ss:$0 sm:$0xff] }
   0xa   :  { %420 = vmatmul.mubr.msk.bf16.vlgmr.msra.gmra.mrb[0].mxu0 %vm63_vm1, %v463_v4 }
   0xb   :  { %443 = vmatprep.mubr.msk.bf16.mxu0 %vm477_vm0, %v476_v0  ;;  %428 = vmatpush3.bf16.msra.mxu1 %v466_v6 }
   0xc   :  { %429 = vmatprep.subr.bf16.mxu1 %v476_v0  ;;  %436 = vmatpush3.bf16.msra.mxu0 %v468_v8 }
   0xd   :  { %437 = vmatprep.subr.bf16.mxu0 %v476_v0 }
   0xf   :  { %430 = vmatpush3.bf16.msra.mxu1 %v467_v7 }
  0x10   :  { %447 = vmatprep.subr.bf16.mxu1 %v476_v0  ;;  %438 = vmatpush3.bf16.msra.mxu0 %v469_v9 }
  0x11   :  { %439 = vmatprep.subr.bf16.mxu0 %v476_v0 }
  0x14   :  { %440 = vmatpush3.bf16.msra.mxu0 %v470_v20 }
  0x15   :  { %441 = vmatprep.subr.bf16.mxu0 %v476_v0 }
  0x18   :  { %442 = vmatpush3.bf16.msra.mxu0 %v471_v21 }
  0xdd   :  { %v101_v11 = vpop.f32.mrb[0].mxu0 }
  0xde   :  { %v102_v12 = vadd.f32 %v374_v10, %v101_v11  ;;  %v421_v13 = vpop.f32.mrb[1].mxu0 }
  0xdf   :  { %v104_v14 = vpop.f32.mrb[2].mxu0 }
  0xe0   :  { %v105_v15 = vadd.f32 %v374_v10, %v104_v14  ;;  %v422_v16 = vpop.f32.mrb[3].mxu0  ;;  %v108_v17 = vmax.f32 %v102_v12, 0.0 }
  0xe2   :  { %v109_v18 = vmax.f32 %v105_v15, 0.0 }
  0xe4   :  { %v110_v19 = vpack.c.bf16 %v109_v18, %v108_v17 }
  0xe6   :  { %432 = vmatmul.mubr.msk.bf16.vlgmr.msra.gmra.mrb[0].mxu1 %vm150_vm2, %v110_v19 }
  0xe7   :  { %455 = vmatprep.mubr.msk.bf16.mxu1 %vm477_vm0, %v476_v0  ;;  %448 = vmatpush3.bf16.msra.mxu1 %v472_v22 }
  0xe8   :  { %449 = vmatprep.subr.bf16.mxu1 %v476_v0 }
  0xeb   :  { %450 = vmatpush3.bf16.msra.mxu1 %v473_v23 }
  0xec   :  { %451 = vmatprep.subr.bf16.mxu1 %v476_v0 }
  0xef   :  { %452 = vmatpush3.bf16.msra.mxu1 %v474_v34 }
  0xf0   :  { %453 = vmatprep.subr.bf16.mxu1 %v476_v0 }
  0xf3   :  { %454 = vmatpush3.bf16.msra.mxu1 %v475_v35 }
 0x1b9   :  { %v188_v25 = vpop.f32.mrb[0].mxu1 }
 0x1ba   :  { %v189_v26 = vadd.f32 %v379_v24, %v188_v25  ;;  %v433_v27 = vpop.f32.mrb[1].mxu1 }
 0x1bb   :  { %v191_v28 = vpop.f32.mrb[2].mxu1 }
 0x1bc   :  { %v192_v29 = vadd.f32 %v379_v24, %v191_v28  ;;  %v434_v30 = vpop.f32.mrb[3].mxu1  ;;  %v195_v31 = vmax.f32 %v189_v26, 0.0 }
 0x1be   :  { %v196_v32 = vmax.f32 %v192_v29, 0.0 }
 0x1c0   :  { %v197_v33 = vpack.c.bf16 %v196_v32, %v195_v31 }
 0x1c2   :  { %444 = vmatmul.mubr.msk.bf16.vlgmr.msra.gmra.mrb[4].mxu0 %vm150_vm2, %v197_v33 }
 0x295   :  { %v274_v37 = vpop.f32.mrb[4].mxu0 }
 0x296   :  { %v275_v38 = vadd.f32 %v385_v36, %v274_v37  ;;  %v445_v39 = vpop.f32.mrb[5].mxu0 }
 0x297   :  { %v277_v40 = vpop.f32.mrb[6].mxu0 }
 0x298   :  { %v278_v41 = vadd.f32 %v385_v36, %v277_v40  ;;  %v446_v42 = vpop.f32.mrb[7].mxu0  ;;  %v281_v43 = vmax.f32 %v275_v38, 0.0 }
 0x29a   :  { %v282_v44 = vmax.f32 %v278_v41, 0.0 }
 0x29c   :  { %v283_v45 = vpack.c.bf16 %v282_v44, %v281_v43 }
 0x29e   :  { %456 = vmatmul.mubr.msk.bf16.vlgmr.msra.gmra.mrb[4].mxu1 %vm150_vm2, %v283_v45 }
 0x371   :  { %v360_v47 = vpop.f32.mrb[4].mxu1 }
 0x372   :  { %v361_v48 = vadd.f32 %v391_v46, %v360_v47  ;;  %v457_v49 = vpop.f32.mrb[5].mxu1 }
 0x373   :  { %v363_v50 = vpop.f32.mrb[6].mxu1 }
 0x374   :  { %368 = vst.msk [vmem:[%s625_s9] sm:$0xff] %vm367_vm3, %v361_v48  ;;  %v364_v51 = vadd.f32 %v391_v46, %v363_v50  ;;  %v458_v52 = vpop.f32.mrb[7].mxu1 }
 0x376   :  { %369 = vst.msk [vmem:[%s625_s9 + $0x8] sm:$0xff] %vm367_vm3, %v364_v51 }

</bundles_post_ra>
